<compile_context>
chip_gen: v7x
topology: tpu7x:2x2x1
jax: 0.10.0
libtpu: 0.0.40
codegen_flags: <defaults>
</compile_context>

<pallas_src>
import math

import jax
import jax.numpy as jnp
from jax.experimental import pallas as pl
from jax.experimental.pallas import tpu as pltpu


def coxmlp_kernel(x_ref, w1_ref, b1_ref, w2_ref, b2_ref, o_ref):
    # In-kernel bf16 cast (cheap VPU op, hidden under the x-tile DMA); fc1 on the
    # MXU with f32 accumulation.
    x_bf = x_ref[...].astype(jnp.bfloat16)
    h = jnp.dot(x_bf, w1_ref[...], preferred_element_type=jnp.float32)
    h = jnp.maximum(h + b1_ref[...], 0.0)            # bias (1, nhid) broadcast + ReLU
    # TODO(synk): dropout is identity in eval mode; a training variant would build the
    # keep-mask with pltpu.prng_seed + pltpu.prng_random_bits.
    # fc2 has a single output column: VPU multiply + XLU lane reduction
    # (keeps the MXU free for the next tile's fc1).
    y = jnp.sum(h * w2_ref[...], axis=-1, keepdims=True) + b2_ref[...]
    o_ref[...] = y.astype(o_ref.dtype)


def _cdiv(a, b):
    return (a + b - 1) // b


def _vmem_capacity_bytes():
    try:
        return int(pltpu.get_tpu_info().vmem_capacity_bytes)
    except Exception:
        return 64 << 20  # conservative fallback (v7x per-TensorCore capacity)


def _vmem_budget_bytes():
    # ~40 MiB budget on v7x (64 MiB VMEM), ~100 MiB on v5e/v6e (128 MiB VMEM).
    return max(24 << 20, _vmem_capacity_bytes() - (24 << 20))


def _dim_semantics():
    """(dimension_semantics, tensorcores_per_chip)."""
    kind = ""
    try:
        kind = jax.devices()[0].device_kind.lower()
    except Exception:
        pass
    if "v7" in kind or "7x" in kind:
        # v7x has 2 TensorCores per chip: CORE_PARALLEL shards the batch grid across both.
        return (pltpu.CORE_PARALLEL,), 2
    # v5e/v6e: single TensorCore; "parallel" vs "arbitrary" is a no-op here.
    return ("parallel",), 1


def _vmem_bytes(tm, nfeat, nhid):
    x_tiles = 2 * tm * nfeat * 4          # double-buffered f32 x tiles
    x_cast = tm * nfeat * 2               # in-kernel bf16 copy of the x tile
    w1 = nfeat * nhid * 2                 # single-buffered bf16 w1^T
    vecs = 4 * (2 * nhid + 128) * 4       # b1 / w2 / b2 rows (lane-padded, generous)
    h_tmp = 2 * tm * nhid * 4             # f32 activation + elementwise temporaries
    o_tiles = 2 * tm * 4                  # double-buffered (tm, 1) output column
    return x_tiles + x_cast + w1 + vecs + h_tmp + o_tiles


def _pick_tm(B, nfeat, nhid, vmem_budget, min_grid=1):
    # Size the batch tile by bytes: ~2 MiB of x per grid step so the pipeline runs
    # near the HBM roofline instead of paying the ~0.35 us/step overhead on tiny tiles.
    target = max(8, _cdiv(2 << 20, nfeat * 4))
    if min_grid > 1:
        target = min(target, _cdiv(B, min_grid))      # >= 1 tile per TensorCore
    tm = B if target >= B else max(8, (target // 8) * 8)
    # Shrink if the resident footprint (incl. the f32 (tm, nhid) activation) would
    # exceed the per-generation VMEM budget.
    while tm > 8 and _vmem_bytes(tm, nfeat, nhid) > vmem_budget:
        tm = max(8, ((tm // 2) // 8) * 8)
    # tm is either a multiple of 8 (< B, ragged tail handled by the cdiv grid) or
    # exactly B (full-dim block, always layout-legal).
    return min(tm, B)


def coxmlp_forward(x, w1, b1, w2, b2, *, tm=None):
    """x: (B, nfeat); w1: (nhid, nfeat); b1: (nhid,); w2: (1, nhid); b2: (1,)."""
    B, nfeat = x.shape
    nhid = w1.shape[0]
    out_dtype = x.dtype

    dims, n_cores = _dim_semantics()
    vmem_budget = _vmem_budget_bytes()
    if tm is None:
        tm = _pick_tm(B, nfeat, nhid, vmem_budget, min_grid=n_cores)

    grid = (_cdiv(B, tm),)

    # Grid-invariant parameters: one-time tiny transforms (w1 kept bf16 to halve its
    # VMEM residency); x itself is NOT touched in the wrapper (no pad / cast pass).
    w1_t = w1.T.astype(jnp.bfloat16)                  # (nfeat, nhid)
    b1_2d = b1.reshape(1, nhid).astype(jnp.float32)   # (1, nhid)
    w2_row = w2.reshape(1, nhid).astype(jnp.float32)  # (1, nhid) - VPU operand
    b2_2d = b2.reshape(1, 1).astype(jnp.float32)      # (1, 1)

    vmem_need = _vmem_bytes(tm, nfeat, nhid)
    vmem_limit = int(max(16 << 20,
                         min(_vmem_capacity_bytes() - (8 << 20),
                             vmem_need + (8 << 20))))

    cost = pl.CostEstimate(
        flops=2 * B * nfeat * nhid + 4 * B * nhid,
        transcendentals=0,
        bytes_accessed=(B * nfeat * 4 + nfeat * nhid * 2
                        + 2 * nhid * 4 + 4 + B * 4),
    )

    def run(weight_mode):
        def spec(shape):
            if weight_mode is None:
                return pl.BlockSpec(shape, lambda i: (0, 0))
            return pl.BlockSpec(shape, lambda i: (0, 0), pipeline_mode=weight_mode)

        return pl.pallas_call(
            coxmlp_kernel,
            out_shape=jax.ShapeDtypeStruct((B, 1), out_dtype),
            grid_spec=pltpu.PrefetchScalarGridSpec(
                num_scalar_prefetch=0,
                grid=grid,
                in_specs=[
                    pl.BlockSpec((tm, nfeat), lambda i: (i, 0)),  # x tile (f32 in HBM)
                    spec((nfeat, nhid)),                          # w1^T (bf16, full)
                    spec((1, nhid)),                              # b1 (f32)
                    spec((1, nhid)),                              # w2 row (f32)
                    spec((1, 1)),                                 # b2 (f32)
                ],
                out_specs=pl.BlockSpec((tm, 1), lambda i: (i, 0)),
            ),
            compiler_params=pltpu.CompilerParams(
                dimension_semantics=dims,
                vmem_limit_bytes=vmem_limit,
            ),
            cost_estimate=cost,
        )(x, w1_t, b1_2d, w2_row, b2_2d)

    try:
        # Grid-invariant operands: single-buffered (no point double-buffering a
        # constant index_map block).
        return run(pl.Buffered(1))
    except Exception:
        # Fallback: some lowerings may not accept pipeline_mode here; the default
        # (double-buffered) configuration is the previously-validated path.
        return run(None)


def xavier_normal(key, shape):
    # nn.init.xavier_normal_ for a Linear weight of shape (fan_out, fan_in)
    fan_out, fan_in = shape
    std = math.sqrt(2.0 / (fan_in + fan_out))
    return std * jax.random.normal(key, shape, dtype=jnp.float32)


if __name__ == "__main__":
    key = jax.random.PRNGKey(0)
    k_x, k_w1, k_b1, k_w2, k_b2 = jax.random.split(key, 5)

    # Small shapes consistent with the module; B intentionally not a multiple of 8.
    B, nfeat, nhid = 100, 64, 32
    dropout_p = 0.5  # unused at inference (training=False)

    x = jax.random.normal(k_x, (B, nfeat), dtype=jnp.float32)

    # Deterministic parameter init (matches init_hidden: xavier_normal weights).
    w1 = xavier_normal(k_w1, (nhid, nfeat))
    b1 = 0.01 * jax.random.normal(k_b1, (nhid,), dtype=jnp.float32)
    w2 = xavier_normal(k_w2, (1, nhid))
    b2 = 0.01 * jax.random.normal(k_b2, (1,), dtype=jnp.float32)

    # Auto-tiled call (single full-batch block at this size).
    y = jax.block_until_ready(coxmlp_forward(x, w1, b1, w2, b2))
    # Also exercise the multi-step grid + ragged last tile path.
    y_tiled = jax.block_until_ready(coxmlp_forward(x, w1, b1, w2, b2, tm=32))

    # Pure-JAX f32 reference; tolerance loosened for the in-kernel bf16 fc1 inputs.
    h_ref = jnp.maximum(x @ w1.T + b1, 0.0)
    y_ref = h_ref @ w2.T + b2
    assert y.shape == (B, 1)
    assert jnp.allclose(y, y_ref, atol=5e-2, rtol=5e-2), float(
        jnp.max(jnp.abs(y - y_ref)))
    assert jnp.allclose(y_tiled, y_ref, atol=5e-2, rtol=5e-2), float(
        jnp.max(jnp.abs(y_tiled - y_ref)))

    print("KERNEL_OK")
</pallas_src>

<mosaic_0001>
module attributes {stable_mosaic.version = 11 : i64} {
  func.func @coxmlp_kernel(%arg0: i32, %arg1: memref<100x64xf32, #tpu.memory_space<vmem>>, %arg2: memref<64x32xbf16, #tpu.memory_space<vmem>>, %arg3: memref<1x32xf32, #tpu.memory_space<vmem>>, %arg4: memref<1x32xf32, #tpu.memory_space<vmem>>, %arg5: memref<1x1xf32, #tpu.memory_space<vmem>>, %arg6: memref<100x1xf32, #tpu.memory_space<vmem>>) attributes {dimension_semantics = [#tpu.dimension_semantics<parallel>], iteration_bounds = array<i64: 1>, scalar_prefetch = 0 : i64, scratch_operands = 0 : i64, tpu.core_type = #tpu.core_type<tc>, window_params = [{transform_indices = @transform_0, window_bounds = array<i64: 100, 64>}, {pipeline_mode = #tpu.pipeline_mode<synchronous>, transform_indices = @transform_1, window_bounds = array<i64: 64, 32>}, {pipeline_mode = #tpu.pipeline_mode<synchronous>, transform_indices = @transform_2, window_bounds = array<i64: 1, 32>}, {pipeline_mode = #tpu.pipeline_mode<synchronous>, transform_indices = @transform_3, window_bounds = array<i64: 1, 32>}, {pipeline_mode = #tpu.pipeline_mode<synchronous>, transform_indices = @transform_4, window_bounds = array<i64: 1, 1>}, {transform_indices = @transform_5, window_bounds = array<i64: 100, 1>}]} {
    %c0 = arith.constant 0 : index
    %c0_0 = arith.constant 0 : index
    %0 = vector.load %arg1[%c0, %c0_0] : memref<100x64xf32, #tpu.memory_space<vmem>>, vector<100x64xf32>
    %1 = arith.truncf %0 : vector<100x64xf32> to vector<100x64xbf16>
    %c0_1 = arith.constant 0 : index
    %c0_2 = arith.constant 0 : index
    %2 = vector.load %arg2[%c0_1, %c0_2] : memref<64x32xbf16, #tpu.memory_space<vmem>>, vector<64x32xbf16>
    %cst = arith.constant dense<0.000000e+00> : vector<100x32xf32>
    %3 = tpu.matmul %1, %2, %cst {dimension_numbers = #tpu.dot_dimension_numbers<[1], [0], [0], [1], [0, 0, 1, 1], [], []>} : vector<100x64xbf16>, vector<64x32xbf16>, vector<100x32xf32> -> vector<100x32xf32>
    %c0_3 = arith.constant 0 : index
    %c0_4 = arith.constant 0 : index
    %4 = vector.load %arg3[%c0_3, %c0_4] : memref<1x32xf32, #tpu.memory_space<vmem>>, vector<1x32xf32>
    %5 = vector.broadcast %4 : vector<1x32xf32> to vector<100x32xf32>
    %6 = arith.addf %3, %5 : vector<100x32xf32>
    %cst_5 = arith.constant 0.000000e+00 : f32
    %7 = vector.broadcast %cst_5 : f32 to vector<100x32xf32>
    %8 = arith.maximumf %6, %7 : vector<100x32xf32>
    %c0_6 = arith.constant 0 : index
    %c0_7 = arith.constant 0 : index
    %9 = vector.load %arg4[%c0_6, %c0_7] : memref<1x32xf32, #tpu.memory_space<vmem>>, vector<1x32xf32>
    %10 = vector.broadcast %9 : vector<1x32xf32> to vector<100x32xf32>
    %11 = arith.mulf %8, %10 : vector<100x32xf32>
    %cst_8 = arith.constant dense<0.000000e+00> : vector<100xf32>
    %12 = vector.multi_reduction <add>, %11, %cst_8 [1] : vector<100x32xf32> to vector<100xf32>
    %13 = vector.shape_cast %12 : vector<100xf32> to vector<100x1xf32>
    %c0_9 = arith.constant 0 : index
    %c0_10 = arith.constant 0 : index
    %14 = vector.load %arg5[%c0_9, %c0_10] : memref<1x1xf32, #tpu.memory_space<vmem>>, vector<1x1xf32>
    %15 = vector.broadcast %14 : vector<1x1xf32> to vector<100x1xf32>
    %16 = arith.addf %13, %15 : vector<100x1xf32>
    %c0_11 = arith.constant 0 : index
    %c0_12 = arith.constant 0 : index
    %17 = vector.load %arg6[%c0_11, %c0_12] : memref<100x1xf32, #tpu.memory_space<vmem>>, vector<100x1xf32>
    tpu.vector_store %arg6[%c0_11, %c0_12], %16 {strides = array<i32>} : memref<100x1xf32, #tpu.memory_space<vmem>>, vector<100x1xf32>,
    return
  }
  func.func @transform_0(%arg0: i32) -> (i32, i32) {
    %c0_i32 = arith.constant 0 : i32
    %c0_i32_0 = arith.constant 0 : i32
    return %arg0, %c0_i32 : i32, i32
  }
  func.func @transform_1(%arg0: i32) -> (i32, i32) {
    %c0_i32 = arith.constant 0 : i32
    %c0_i32_0 = arith.constant 0 : i32
    %c0_i32_1 = arith.constant 0 : i32
    return %c0_i32, %c0_i32_0 : i32, i32
  }
  func.func @transform_2(%arg0: i32) -> (i32, i32) {
    %c0_i32 = arith.constant 0 : i32
    %c0_i32_0 = arith.constant 0 : i32
    %c0_i32_1 = arith.constant 0 : i32
    return %c0_i32, %c0_i32_0 : i32, i32
  }
  func.func @transform_3(%arg0: i32) -> (i32, i32) {
    %c0_i32 = arith.constant 0 : i32
    %c0_i32_0 = arith.constant 0 : i32
    %c0_i32_1 = arith.constant 0 : i32
    return %c0_i32, %c0_i32_0 : i32, i32
  }
  func.func @transform_4(%arg0: i32) -> (i32, i32) {
    %c0_i32 = arith.constant 0 : i32
    %c0_i32_0 = arith.constant 0 : i32
    %c0_i32_1 = arith.constant 0 : i32
    return %c0_i32, %c0_i32_0 : i32, i32
  }
  func.func @transform_5(%arg0: i32) -> (i32, i32) {
    %c0_i32 = arith.constant 0 : i32
    %c0_i32_0 = arith.constant 0 : i32
    return %arg0, %c0_i32 : i32, i32
  }
}

module attributes {stable_mosaic.version = 11 : i64} {
  func.func @coxmlp_kernel(%arg0: i32, %arg1: memref<100x64xf32, #tpu.memory_space<vmem>>, %arg2: memref<64x32xbf16, #tpu.memory_space<vmem>>, %arg3: memref<1x32xf32, #tpu.memory_space<vmem>>, %arg4: memref<1x32xf32, #tpu.memory_space<vmem>>, %arg5: memref<1x1xf32, #tpu.memory_space<vmem>>, %arg6: memref<100x1xf32, #tpu.memory_space<vmem>>) attributes {dimension_semantics = [#tpu.dimension_semantics<parallel>], iteration_bounds = array<i64: 1>, scalar_prefetch = 0 : i64, scratch_operands = 0 : i64, tpu.core_type = #tpu.core_type<tc>, window_params = [{transform_indices = @transform_0, window_bounds = array<i64: 100, 64>}, {pipeline_mode = #tpu.pipeline_mode<synchronous>, transform_indices = @transform_1, window_bounds = array<i64: 64, 32>}, {pipeline_mode = #tpu.pipeline_mode<synchronous>, transform_indices = @transform_2, window_bounds = array<i64: 1, 32>}, {pipeline_mode = #tpu.pipeline_mode<synchronous>, transform_indices = @transform_3, window_bounds = array<i64: 1, 32>}, {pipeline_mode = #tpu.pipeline_mode<synchronous>, transform_indices = @transform_4, window_bounds = array<i64: 1, 1>}, {transform_indices = @transform_5, window_bounds = array<i64: 100, 1>}]} {
    %c0 = arith.constant 0 : index
    %c0_0 = arith.constant 0 : index
    %0 = vector.load %arg1[%c0, %c0_0] : memref<100x64xf32, #tpu.memory_space<vmem>>, vector<100x64xf32>
    %1 = arith.truncf %0 : vector<100x64xf32> to vector<100x64xbf16>
    %c0_1 = arith.constant 0 : index
    %c0_2 = arith.constant 0 : index
    %2 = vector.load %arg2[%c0_1, %c0_2] : memref<64x32xbf16, #tpu.memory_space<vmem>>, vector<64x32xbf16>
    %cst = arith.constant dense<0.000000e+00> : vector<100x32xf32>
    %3 = tpu.matmul %1, %2, %cst {dimension_numbers = #tpu.dot_dimension_numbers<[1], [0], [0], [1], [0, 0, 1, 1], [], []>} : vector<100x64xbf16>, vector<64x32xbf16>, vector<100x32xf32> -> vector<100x32xf32>
    %c0_3 = arith.constant 0 : index
    %c0_4 = arith.constant 0 : index
    %4 = vector.load %arg3[%c0_3, %c0_4] : memref<1x32xf32, #tpu.memory_space<vmem>>, vector<1x32xf32>
    %5 = vector.broadcast %4 : vector<1x32xf32> to vector<100x32xf32>
    %6 = arith.addf %3, %5 : vector<100x32xf32>
    %cst_5 = arith.constant 0.000000e+00 : f32
    %7 = vector.broadcast %cst_5 : f32 to vector<100x32xf32>
    %8 = arith.maximumf %6, %7 : vector<100x32xf32>
    %c0_6 = arith.constant 0 : index
    %c0_7 = arith.constant 0 : index
    %9 = vector.load %arg4[%c0_6, %c0_7] : memref<1x32xf32, #tpu.memory_space<vmem>>, vector<1x32xf32>
    %10 = vector.broadcast %9 : vector<1x32xf32> to vector<100x32xf32>
    %11 = arith.mulf %8, %10 : vector<100x32xf32>
    %cst_8 = arith.constant dense<0.000000e+00> : vector<100xf32>
    %12 = vector.multi_reduction <add>, %11, %cst_8 [1] : vector<100x32xf32> to vector<100xf32>
    %13 = vector.shape_cast %12 : vector<100xf32> to vector<100x1xf32>
    %c0_9 = arith.constant 0 : index
    %c0_10 = arith.constant 0 : index
    %14 = vector.load %arg5[%c0_9, %c0_10] : memref<1x1xf32, #tpu.memory_space<vmem>>, vector<1x1xf32>
    %15 = vector.broadcast %14 : vector<1x1xf32> to vector<100x1xf32>
    %16 = arith.addf %13, %15 : vector<100x1xf32>
    %c0_11 = arith.constant 0 : index
    %c0_12 = arith.constant 0 : index
    %17 = vector.load %arg6[%c0_11, %c0_12] : memref<100x1xf32, #tpu.memory_space<vmem>>, vector<100x1xf32>
    tpu.vector_store %arg6[%c0_11, %c0_12], %16 {strides = array<i32>} : memref<100x1xf32, #tpu.memory_space<vmem>>, vector<100x1xf32>,
    return
  }
  func.func @transform_0(%arg0: i32) -> (i32, i32) {
    %c0_i32 = arith.constant 0 : i32
    %c0_i32_0 = arith.constant 0 : i32
    return %arg0, %c0_i32 : i32, i32
  }
  func.func @transform_1(%arg0: i32) -> (i32, i32) {
    %c0_i32 = arith.constant 0 : i32
    %c0_i32_0 = arith.constant 0 : i32
    %c0_i32_1 = arith.constant 0 : i32
    return %c0_i32, %c0_i32_0 : i32, i32
  }
  func.func @transform_2(%arg0: i32) -> (i32, i32) {
    %c0_i32 = arith.constant 0 : i32
    %c0_i32_0 = arith.constant 0 : i32
    %c0_i32_1 = arith.constant 0 : i32
    return %c0_i32, %c0_i32_0 : i32, i32
  }
  func.func @transform_3(%arg0: i32) -> (i32, i32) {
    %c0_i32 = arith.constant 0 : i32
    %c0_i32_0 = arith.constant 0 : i32
    %c0_i32_1 = arith.constant 0 : i32
    return %c0_i32, %c0_i32_0 : i32, i32
  }
  func.func @transform_4(%arg0: i32) -> (i32, i32) {
    %c0_i32 = arith.constant 0 : i32
    %c0_i32_0 = arith.constant 0 : i32
    %c0_i32_1 = arith.constant 0 : i32
    return %c0_i32, %c0_i32_0 : i32, i32
  }
  func.func @transform_5(%arg0: i32) -> (i32, i32) {
    %c0_i32 = arith.constant 0 : i32
    %c0_i32_0 = arith.constant 0 : i32
    return %arg0, %c0_i32 : i32, i32
  }
}

</mosaic_0001>

<bundles_post_ra>
// kernel: tpu_custom_call.1
= control target key start
LH: loop header
LB: loop body
LE: loop exit
PB: predicated region body
PF: predicated region fallthrough
CT: control target
= control target key end

     0   :  { %v380_v0 = vmov 0.0   ;;  %vm381_vm0 = vmmov 0   ;;  %vm82_vm1 = vcmask 523264   ;;  %vm225_vm2 = vcmask 261120   ;;  %s579_s1 = inlined_call_operand.vmem [shape: bf16[64,32], index: 1, kind: input, shape index: {}]   ;;  %s580_s0 = inlined_call_operand.vmem [shape: f32[100,64], index: 0, kind: input, shape index: {}]   ;;  %s581_s4 = inlined_call_operand.<no memory space> [shape: f32[1,1], index: 4, kind: input, shape index: {}]   ;;  %s582_s2 = inlined_call_operand.vmem [shape: f32[1,32], index: 2, kind: input, shape index: {}]   ;;  %s583_s3 = inlined_call_operand.vmem [shape: f32[1,32], index: 3, kind: input, shape index: {}]   ;;  %s584_s5 = inlined_call_operand.vmem [shape: f32[100,1], index: 5, kind: output, shape index: {}]  }
   0x1   :  { %330 = vmatprep.subr.bf16.mxu0 %v380_v0  ;;  %v376_v1 = vld [vmem:[%s579_s1] sm:$0xff]   ;;  %366 = vmatprep.subr.bf16.mxu1 %v380_v0  ;;  %v377_v2 = vld [vmem:[%s579_s1 + $0x8] sm:$0xff]   ;;  %v378_v3 = vld [vmem:[%s579_s1 + $0x10] sm:$0xff]   ;;  %v10_v25 = vstv %s581_s4  ;;  %vm262_vm3 = vcmask 257024   ;;  %vm286_vm4 = vcmask 7168   ;;  %vm299_vm5 = vcmask 3072  }
   0x2   :  { %338 = vmatprep.mubr.msk.bf16.mxu0 %vm381_vm0, %v380_v0  ;;  %354 = vmatprep.mubr.msk.bf16.mxu1 %vm381_vm0, %v380_v0  ;;  %v379_v4 = vld [vmem:[%s579_s1 + $0x18] sm:$0xff]   ;;  %v23_v5 = vld [vmem:[%s580_s0] sm:$0xff]  ;;  %v24_v6 = vld [vmem:[%s580_s0 + $0x8] sm:$0xff]  ;;  %11 = vst [vmem:[#allocation2] sm:$0x1] %v10_v25 }
   0x3   :  { %331 = vmatpush3.bf16.msra.mxu0 %v376_v1  ;;  %370 = vmatpush3.bf16.msra.mxu1 %v376_v1  ;;  %v31_v7 = vld [vmem:[%s580_s0 + $0x40] sm:$0xff]  ;;  %v32_v8 = vld [vmem:[%s580_s0 + $0x48] sm:$0xff]  ;;  %v36_v9 = vpack.c.bf16 %v24_v6, %v23_v5  ;;  %v25_v11 = vld [vmem:[%s580_s0 + $0x10] sm:$0xff] }
   0x4   :  { %332 = vmatprep.subr.bf16.mxu0 %v380_v0  ;;  %367 = vmatprep.subr.bf16.mxu1 %v380_v0  ;;  %v40_v10 = vpack.c.bf16 %v32_v8, %v31_v7  ;;  %v26_v12 = vld [vmem:[%s580_s0 + $0x18] sm:$0xff]  ;;  %v33_v13 = vld [vmem:[%s580_s0 + $0x50] sm:$0xff]  ;;  %v27_v17 = vld [vmem:[%s580_s0 + $0x20] sm:$0xff] }
   0x5   :  { %v34_v14 = vld [vmem:[%s580_s0 + $0x58] sm:$0xff]  ;;  %v37_v15 = vpack.c.bf16 %v26_v12, %v25_v11  ;;  %v28_v18 = vld [vmem:[%s580_s0 + $0x28] sm:$0xff]  ;;  %v35_v19 = vld [vmem:[%s580_s0 + $0x60] sm:$0xf] }
   0x6   :  { %v41_v16 = vpack.c.bf16 %v34_v14, %v33_v13  ;;  %v38_v20 = vpack.c.bf16 %v28_v18, %v27_v17  ;;  %v42_v21 = vpack.c.bf16 %v35_v19, %v35_v19  ;;  %v29_v22 = vld [vmem:[%s580_s0 + $0x30] sm:$0xff]  ;;  %v30_v23 = vld [vmem:[%s580_s0 + $0x38] sm:$0xff]  ;;  %v483_v26 = vld [vmem:[%s582_s2] ss:$0 sm:$0xff] }
   0x7   :  { %333 = vmatpush3.bf16.msra.mxu0 %v377_v2  ;;  %371 = vmatpush3.bf16.msra.mxu1 %v377_v2  ;;  %v39_v24 = vpack.c.bf16 %v30_v23, %v29_v22  ;;  %v490_v35 = vld [vmem:[%s583_s3] ss:$0 sm:$0xff] }
   0x8   :  { %334 = vmatprep.subr.bf16.mxu0 %v380_v0  ;;  %368 = vmatprep.subr.bf16.mxu1 %v380_v0 }
   0xb   :  { %335 = vmatpush3.bf16.msra.mxu0 %v378_v3  ;;  %372 = vmatpush3.bf16.msra.mxu1 %v378_v3 }
   0xc   :  { %336 = vmatprep.subr.bf16.mxu0 %v380_v0  ;;  %369 = vmatprep.subr.bf16.mxu1 %v380_v0 }
   0xf   :  { %337 = vmatpush3.bf16.msra.mxu0 %v379_v4  ;;  %373 = vmatpush3.bf16.msra.mxu1 %v379_v4 }
  0x12   :  { %339 = vmatmul.mubr.msk.bf16.vlgmr.msra.gmra.mrb[0].mxu0 %vm82_vm1, %v36_v9  ;;  %355 = vmatmul.mubr.msk.bf16.vlgmr.msra.gmra.mrb[0].mxu1 %vm82_vm1, %v40_v10 }
  0x13   :  { %342 = vmatprep.mubr.msk.bf16.mxu0 %vm381_vm0, %v380_v0  ;;  %358 = vmatprep.mubr.msk.bf16.mxu1 %vm381_vm0, %v380_v0 }
  0x1a   :  { %343 = vmatmul.mubr.msk.bf16.gmra.mrb[4].mxu0 %vm82_vm1, %v37_v15  ;;  %359 = vmatmul.mubr.msk.bf16.gmra.mrb[4].mxu1 %vm82_vm1, %v41_v16 }
  0x1b   :  { %346 = vmatprep.mubr.msk.bf16.mxu0 %vm381_vm0, %v380_v0  ;;  %362 = vmatprep.mubr.msk.bf16.mxu1 %vm381_vm0, %v380_v0 }
  0x22   :  { %347 = vmatmul.mubr.msk.bf16.gmra.mrb[8].mxu0 %vm82_vm1, %v38_v20  ;;  %363 = vmatmul.mubr.msk.bf16.gmra.mrb[8].mxu1 %vm82_vm1, %v42_v21 }
  0x23   :  { %350 = vmatprep.mubr.msk.bf16.mxu0 %vm381_vm0, %v380_v0 }
  0x2a   :  { %351 = vmatmul.mubr.msk.bf16.gmra.mrb[12].mxu0 %vm82_vm1, %v39_v24 }
  0xe5   :  { %v138_v27 = vpop.f32.mrb[0].mxu0  ;;  %v170_v28 = vpop.f32.mrb[0].mxu1 }
  0xe6   :  { %v139_v29 = vadd.f32 %v483_v26, %v138_v27  ;;  %v340_v30 = vpop.f32.mrb[1].mxu0  ;;  %v171_v31 = vadd.f32 %v483_v26, %v170_v28  ;;  %v356_v32 = vpop.f32.mrb[1].mxu1 }
  0xe7   :  { %v141_v33 = vpop.f32.mrb[2].mxu0  ;;  %v173_v34 = vpop.f32.mrb[2].mxu1 }
  0xe8   :  { %v192_v36 = vmax.f32 %v139_v29, 0.0  ;;  %v142_v37 = vadd.f32 %v483_v26, %v141_v33  ;;  %v200_v38 = vmax.f32 %v171_v31, 0.0  ;;  %v341_v39 = vpop.f32.mrb[3].mxu0  ;;  %v174_v40 = vadd.f32 %v483_v26, %v173_v34  ;;  %v357_v41 = vpop.f32.mrb[3].mxu1 }
  0xea   :  { %v201_v42 = vmax.f32 %v174_v40, 0.0  ;;  %v212_v43 = vmul.f32 %v490_v35, %v192_v36  ;;  %v220_v44 = vmul.f32 %v490_v35, %v200_v38  ;;  %v193_v45 = vmax.f32 %v142_v37, 0.0 }
  0xec   :  { %v226_v46 = vsel %vm225_vm2, %v212_v43, 0.0  ;;  %v221_v47 = vmul.f32 %v490_v35, %v201_v42  ;;  %v250_v54 = vsel %vm225_vm2, %v220_v44, 0.0  ;;  %v213_v62 = vmul.f32 %v490_v35, %v193_v45  ;;  %v318_v45 = vld [vmem:[#allocation2] ss:$0 sm:$0xff] }
  0xed   :  { %227 = vadd.xlane.f32.xlu0 %v226_v46  ;;  %v146_v48 = vpop.f32.mrb[4].mxu0  ;;  %v178_v49 = vpop.f32.mrb[4].mxu1 }
  0xee   :  { %v147_v50 = vadd.f32 %v483_v26, %v146_v48  ;;  %v344_v51 = vpop.f32.mrb[5].mxu0  ;;  %v253_v52 = vsel %vm225_vm2, %v221_v47, 0.0  ;;  %v179_v53 = vadd.f32 %v483_v26, %v178_v49  ;;  %v360_v55 = vpop.f32.mrb[5].mxu1  ;;  %v229_v3 = vsel %vm225_vm2, %v213_v62, 0.0 }
  0xef   :  { %v149_v56 = vpop.f32.mrb[6].mxu0  ;;  %254 = vadd.xlane.f32.xlu1 %v253_v52  ;;  %v181_v57 = vpop.f32.mrb[6].mxu1 }
  0xf0   :  { %v194_v58 = vmax.f32 %v147_v50, 0.0  ;;  %v150_v59 = vadd.f32 %v483_v26, %v149_v56  ;;  %v345_v60 = vpop.f32.mrb[7].mxu0  ;;  %v202_v61 = vmax.f32 %v179_v53, 0.0  ;;  %v361_v63 = vpop.f32.mrb[7].mxu1  ;;  %v182_v25 = vadd.f32 %v483_v26, %v181_v57 }
  0xf1   :  { %251 = vadd.xlane.f32.xlu0 %v250_v54 }
  0xf2   :  { %v195_v0 = vmax.f32 %v150_v59, 0.0  ;;  %v214_v1 = vmul.f32 %v490_v35, %v194_v58  ;;  %v222_v2 = vmul.f32 %v490_v35, %v202_v61  ;;  %v203_v36 = vmax.f32 %v182_v25, 0.0 }
  0xf4   :  { %v232_v4 = vsel %vm225_vm2, %v214_v1, 0.0  ;;  %v215_v5 = vmul.f32 %v490_v35, %v195_v0  ;;  %v256_v10 = vsel %vm225_vm2, %v222_v2, 0.0  ;;  %v223_v44 = vmul.f32 %v490_v35, %v203_v36 }
  0xf5   :  { %230 = vadd.xlane.f32.xlu0 %v229_v3  ;;  %233 = vadd.xlane.f32.xlu1 %v232_v4  ;;  %v154_v6 = vpop.f32.mrb[8].mxu0  ;;  %v186_v7 = vpop.f32.mrb[8].mxu1 }
  0xf6   :  { %v155_v8 = vadd.f32 %v483_v26, %v154_v6  ;;  %v348_v9 = vpop.f32.mrb[9].mxu0  ;;  %v364_v11 = vpop.f32.mrb[9].mxu1  ;;  %v235_v17 = vsel %vm225_vm2, %v215_v5, 0.0  ;;  %v187_v21 = vadd.f32 %v483_v26, %v186_v7 }
  0xf7   :  { %v157_v12 = vpop.f32.mrb[10].mxu0  ;;  %v189_v13 = vpop.f32.mrb[10].mxu1 }
  0xf8   :  { %v196_v14 = vmax.f32 %v155_v8, 0.0  ;;  %v158_v15 = vadd.f32 %v483_v26, %v157_v12  ;;  %v349_v16 = vpop.f32.mrb[11].mxu0  ;;  %v365_v18 = vpop.f32.mrb[11].mxu1  ;;  %v204_v30 = vmax.f32 %v187_v21, 0.0 }
  0xf9   :  { %257 = vadd.xlane.f32.xlu0 %v256_v10  ;;  %236 = vadd.xlane.f32.xlu1 %v235_v17 }
  0xfa   :  { %v197_v19 = vmax.f32 %v158_v15, 0.0  ;;  %v216_v20 = vmul.f32 %v490_v35, %v196_v14  ;;  %v224_v39 = vmul.f32 %v490_v35, %v204_v30 }
  0xfc   :  { %v238_v22 = vsel %vm225_vm2, %v216_v20, 0.0  ;;  %v217_v23 = vmul.f32 %v490_v35, %v197_v19  ;;  %v263_v43 = vsel %vm262_vm3, %v224_v39, 0.0 }
  0xfd   :  { %239 = vadd.xlane.f32.xlu0 %v238_v22  ;;  %v162_v24 = vpop.f32.mrb[12].mxu0 }
  0xfe   :  { %v163_v27 = vadd.f32 %v483_v26, %v162_v24  ;;  %v352_v28 = vpop.f32.mrb[13].mxu0  ;;  %v241_v29 = vsel %vm225_vm2, %v217_v23, 0.0 }
  0xff   :  { %242 = vadd.xlane.f32.xlu1 %v241_v29  ;;  %v165_v31 = vpop.f32.mrb[14].mxu0 }
 0x100   :  { %v198_v32 = vmax.f32 %v163_v27, 0.0  ;;  %v166_v33 = vadd.f32 %v483_v26, %v165_v31  ;;  %v353_v34 = vpop.f32.mrb[15].mxu0  ;;  %v259_v26 = vsel %vm225_vm2, %v223_v44, 0.0 }
 0x102   :  { %v199_v37 = vmax.f32 %v166_v33, 0.0  ;;  %v218_v38 = vmul.f32 %v490_v35, %v198_v32 }
 0x104   :  { %v244_v40 = vsel %vm225_vm2, %v218_v38, 0.0  ;;  %v219_v41 = vmul.f32 %v490_v35, %v199_v37 }
 0x105   :  { %245 = vadd.xlane.f32.xlu0 %v244_v40 }
 0x106   :  { %v247_v42 = vsel %vm225_vm2, %v219_v41, 0.0 }
 0x107   :  { %248 = vadd.xlane.f32.xlu1 %v247_v42 }
 0x109   :  { %264 = vadd.xlane.f32.xlu0 %v263_v43 }
 0x10b   :  { %260 = vadd.xlane.f32.xlu1 %v259_v26 }
 0x17a   :  { %v228_v46 = vpop.xlane.xlu0 %227 }
 0x17b   :  { %v273_v47 = vadd.f32 %v318_v45, %v228_v46 }
 0x17c   :  { %v255_v48 = vpop.xlane.xlu1 %254 }
 0x17d   :  { %287 = vst.msk [vmem:[%s584_s5] sm:$0xff] %vm286_vm4, %v273_v47  ;;  %v282_v49 = vadd.f32 %v318_v45, %v255_v48 }
 0x17e   :  { %v252_v50 = vpop.xlane.xlu0 %251 }
 0x17f   :  { %296 = vst.msk [vmem:[%s584_s5 + $0x48] sm:$0xff] %vm286_vm4, %v282_v49  ;;  %v281_v35 = vadd.f32 %v318_v45, %v252_v50 }
 0x181   :  { %295 = vst.msk [vmem:[%s584_s5 + $0x40] sm:$0xff] %vm286_vm4, %v281_v35 }
 0x182   :  { %v231_v51 = vpop.xlane.xlu0 %230  ;;  %v234_v52 = vpop.xlane.xlu1 %233 }
 0x183   :  { %v274_v53 = vadd.f32 %v318_v45, %v231_v51  ;;  %v275_v54 = vadd.f32 %v318_v45, %v234_v52 }
 0x185   :  { %288 = vst.msk [vmem:[%s584_s5 + $0x8] sm:$0xff] %vm286_vm4, %v274_v53  ;;  %289 = vst.msk [vmem:[%s584_s5 + $0x10] sm:$0xff] %vm286_vm4, %v275_v54 }
 0x186   :  { %v258_v55 = vpop.xlane.xlu0 %257  ;;  %v237_v56 = vpop.xlane.xlu1 %236 }
 0x187   :  { %v283_v57 = vadd.f32 %v318_v45, %v258_v55  ;;  %v276_v58 = vadd.f32 %v318_v45, %v237_v56 }
 0x189   :  { %297 = vst.msk [vmem:[%s584_s5 + $0x50] sm:$0xff] %vm286_vm4, %v283_v57  ;;  %290 = vst.msk [vmem:[%s584_s5 + $0x18] sm:$0xff] %vm286_vm4, %v276_v58 }
 0x18a   :  { %v240_v59 = vpop.xlane.xlu0 %239 }
 0x18b   :  { %v277_v60 = vadd.f32 %v318_v45, %v240_v59 }
 0x18c   :  { %v243_v61 = vpop.xlane.xlu1 %242 }
 0x18d   :  { %291 = vst.msk [vmem:[%s584_s5 + $0x20] sm:$0xff] %vm286_vm4, %v277_v60  ;;  %v278_v62 = vadd.f32 %v318_v45, %v243_v61 }
 0x18f   :  { %292 = vst.msk [vmem:[%s584_s5 + $0x28] sm:$0xff] %vm286_vm4, %v278_v62 }
 0x192   :  { %v246_v63 = vpop.xlane.xlu0 %245 }
 0x193   :  { %v279_v0 = vadd.f32 %v318_v45, %v246_v63 }
 0x194   :  { %v249_v1 = vpop.xlane.xlu1 %248 }
 0x195   :  { %293 = vst.msk [vmem:[%s584_s5 + $0x30] sm:$0xff] %vm286_vm4, %v279_v0  ;;  %v280_v2 = vadd.f32 %v318_v45, %v249_v1 }
 0x196   :  { %v265_v3 = vpop.xlane.xlu0 %264 }
 0x197   :  { %294 = vst.msk [vmem:[%s584_s5 + $0x38] sm:$0xff] %vm286_vm4, %v280_v2  ;;  %v285_v4 = vadd.f32 %v318_v45, %v265_v3 }
 0x198   :  { %v261_v5 = vpop.xlane.xlu1 %260 }
 0x199   :  { %300 = vst.msk [vmem:[%s584_s5 + $0x60] sm:$0xf] %vm299_vm5, %v285_v4  ;;  %v284_v6 = vadd.f32 %v318_v45, %v261_v5 }
 0x19b   :  { %298 = vst.msk [vmem:[%s584_s5 + $0x58] sm:$0xff] %vm286_vm4, %v284_v6 }

// kernel: tpu_custom_call.1
= control target key start
LH: loop header
LB: loop body
LE: loop exit
PB: predicated region body
PF: predicated region fallthrough
CT: control target
= control target key end

     0   :  { %v380_v0 = vmov 0.0   ;;  %vm381_vm0 = vmmov 0   ;;  %vm82_vm1 = vcmask 523264   ;;  %vm225_vm2 = vcmask 261120   ;;  %s579_s1 = inlined_call_operand.vmem [shape: bf16[64,32], index: 1, kind: input, shape index: {}]   ;;  %s580_s0 = inlined_call_operand.vmem [shape: f32[100,64], index: 0, kind: input, shape index: {}]   ;;  %s581_s4 = inlined_call_operand.<no memory space> [shape: f32[1,1], index: 4, kind: input, shape index: {}]   ;;  %s582_s2 = inlined_call_operand.vmem [shape: f32[1,32], index: 2, kind: input, shape index: {}]   ;;  %s583_s3 = inlined_call_operand.vmem [shape: f32[1,32], index: 3, kind: input, shape index: {}]   ;;  %s584_s5 = inlined_call_operand.vmem [shape: f32[100,1], index: 5, kind: output, shape index: {}]  }
   0x1   :  { %330 = vmatprep.subr.bf16.mxu0 %v380_v0  ;;  %v376_v1 = vld [vmem:[%s579_s1] sm:$0xff]   ;;  %366 = vmatprep.subr.bf16.mxu1 %v380_v0  ;;  %v377_v2 = vld [vmem:[%s579_s1 + $0x8] sm:$0xff]   ;;  %v378_v3 = vld [vmem:[%s579_s1 + $0x10] sm:$0xff]   ;;  %v10_v25 = vstv %s581_s4  ;;  %vm262_vm3 = vcmask 257024   ;;  %vm286_vm4 = vcmask 7168   ;;  %vm299_vm5 = vcmask 3072  }
   0x2   :  { %338 = vmatprep.mubr.msk.bf16.mxu0 %vm381_vm0, %v380_v0  ;;  %354 = vmatprep.mubr.msk.bf16.mxu1 %vm381_vm0, %v380_v0  ;;  %v379_v4 = vld [vmem:[%s579_s1 + $0x18] sm:$0xff]   ;;  %v23_v5 = vld [vmem:[%s580_s0] sm:$0xff]  ;;  %v24_v6 = vld [vmem:[%s580_s0 + $0x8] sm:$0xff]  ;;  %11 = vst [vmem:[#allocation2] sm:$0x1] %v10_v25 }
   0x3   :  { %331 = vmatpush3.bf16.msra.mxu0 %v376_v1  ;;  %370 = vmatpush3.bf16.msra.mxu1 %v376_v1  ;;  %v31_v7 = vld [vmem:[%s580_s0 + $0x40] sm:$0xff]  ;;  %v32_v8 = vld [vmem:[%s580_s0 + $0x48] sm:$0xff]  ;;  %v36_v9 = vpack.c.bf16 %v24_v6, %v23_v5  ;;  %v25_v11 = vld [vmem:[%s580_s0 + $0x10] sm:$0xff] }
   0x4   :  { %332 = vmatprep.subr.bf16.mxu0 %v380_v0  ;;  %367 = vmatprep.subr.bf16.mxu1 %v380_v0  ;;  %v40_v10 = vpack.c.bf16 %v32_v8, %v31_v7  ;;  %v26_v12 = vld [vmem:[%s580_s0 + $0x18] sm:$0xff]  ;;  %v33_v13 = vld [vmem:[%s580_s0 + $0x50] sm:$0xff]  ;;  %v27_v17 = vld [vmem:[%s580_s0 + $0x20] sm:$0xff] }
   0x5   :  { %v34_v14 = vld [vmem:[%s580_s0 + $0x58] sm:$0xff]  ;;  %v37_v15 = vpack.c.bf16 %v26_v12, %v25_v11  ;;  %v28_v18 = vld [vmem:[%s580_s0 + $0x28] sm:$0xff]  ;;  %v35_v19 = vld [vmem:[%s580_s0 + $0x60] sm:$0xf] }
   0x6   :  { %v41_v16 = vpack.c.bf16 %v34_v14, %v33_v13  ;;  %v38_v20 = vpack.c.bf16 %v28_v18, %v27_v17  ;;  %v42_v21 = vpack.c.bf16 %v35_v19, %v35_v19  ;;  %v29_v22 = vld [vmem:[%s580_s0 + $0x30] sm:$0xff]  ;;  %v30_v23 = vld [vmem:[%s580_s0 + $0x38] sm:$0xff]  ;;  %v483_v26 = vld [vmem:[%s582_s2] ss:$0 sm:$0xff] }
   0x7   :  { %333 = vmatpush3.bf16.msra.mxu0 %v377_v2  ;;  %371 = vmatpush3.bf16.msra.mxu1 %v377_v2  ;;  %v39_v24 = vpack.c.bf16 %v30_v23, %v29_v22  ;;  %v490_v35 = vld [vmem:[%s583_s3] ss:$0 sm:$0xff] }
   0x8   :  { %334 = vmatprep.subr.bf16.mxu0 %v380_v0  ;;  %368 = vmatprep.subr.bf16.mxu1 %v380_v0 }
   0xb   :  { %335 = vmatpush3.bf16.msra.mxu0 %v378_v3  ;;  %372 = vmatpush3.bf16.msra.mxu1 %v378_v3 }
   0xc   :  { %336 = vmatprep.subr.bf16.mxu0 %v380_v0  ;;  %369 = vmatprep.subr.bf16.mxu1 %v380_v0 }
   0xf   :  { %337 = vmatpush3.bf16.msra.mxu0 %v379_v4  ;;  %373 = vmatpush3.bf16.msra.mxu1 %v379_v4 }
  0x12   :  { %339 = vmatmul.mubr.msk.bf16.vlgmr.msra.gmra.mrb[0].mxu0 %vm82_vm1, %v36_v9  ;;  %355 = vmatmul.mubr.msk.bf16.vlgmr.msra.gmra.mrb[0].mxu1 %vm82_vm1, %v40_v10 }
  0x13   :  { %342 = vmatprep.mubr.msk.bf16.mxu0 %vm381_vm0, %v380_v0  ;;  %358 = vmatprep.mubr.msk.bf16.mxu1 %vm381_vm0, %v380_v0 }
  0x1a   :  { %343 = vmatmul.mubr.msk.bf16.gmra.mrb[4].mxu0 %vm82_vm1, %v37_v15  ;;  %359 = vmatmul.mubr.msk.bf16.gmra.mrb[4].mxu1 %vm82_vm1, %v41_v16 }
  0x1b   :  { %346 = vmatprep.mubr.msk.bf16.mxu0 %vm381_vm0, %v380_v0  ;;  %362 = vmatprep.mubr.msk.bf16.mxu1 %vm381_vm0, %v380_v0 }
  0x22   :  { %347 = vmatmul.mubr.msk.bf16.gmra.mrb[8].mxu0 %vm82_vm1, %v38_v20  ;;  %363 = vmatmul.mubr.msk.bf16.gmra.mrb[8].mxu1 %vm82_vm1, %v42_v21 }
  0x23   :  { %350 = vmatprep.mubr.msk.bf16.mxu0 %vm381_vm0, %v380_v0 }
  0x2a   :  { %351 = vmatmul.mubr.msk.bf16.gmra.mrb[12].mxu0 %vm82_vm1, %v39_v24 }
  0xe5   :  { %v138_v27 = vpop.f32.mrb[0].mxu0  ;;  %v170_v28 = vpop.f32.mrb[0].mxu1 }
  0xe6   :  { %v139_v29 = vadd.f32 %v483_v26, %v138_v27  ;;  %v340_v30 = vpop.f32.mrb[1].mxu0  ;;  %v171_v31 = vadd.f32 %v483_v26, %v170_v28  ;;  %v356_v32 = vpop.f32.mrb[1].mxu1 }
  0xe7   :  { %v141_v33 = vpop.f32.mrb[2].mxu0  ;;  %v173_v34 = vpop.f32.mrb[2].mxu1 }
  0xe8   :  { %v192_v36 = vmax.f32 %v139_v29, 0.0  ;;  %v142_v37 = vadd.f32 %v483_v26, %v141_v33  ;;  %v200_v38 = vmax.f32 %v171_v31, 0.0  ;;  %v341_v39 = vpop.f32.mrb[3].mxu0  ;;  %v174_v40 = vadd.f32 %v483_v26, %v173_v34  ;;  %v357_v41 = vpop.f32.mrb[3].mxu1 }
  0xea   :  { %v201_v42 = vmax.f32 %v174_v40, 0.0  ;;  %v212_v43 = vmul.f32 %v490_v35, %v192_v36  ;;  %v220_v44 = vmul.f32 %v490_v35, %v200_v38  ;;  %v193_v45 = vmax.f32 %v142_v37, 0.0 }
  0xec   :  { %v226_v46 = vsel %vm225_vm2, %v212_v43, 0.0  ;;  %v221_v47 = vmul.f32 %v490_v35, %v201_v42  ;;  %v250_v54 = vsel %vm225_vm2, %v220_v44, 0.0  ;;  %v213_v62 = vmul.f32 %v490_v35, %v193_v45  ;;  %v318_v45 = vld [vmem:[#allocation2] ss:$0 sm:$0xff] }
  0xed   :  { %227 = vadd.xlane.f32.xlu0 %v226_v46  ;;  %v146_v48 = vpop.f32.mrb[4].mxu0  ;;  %v178_v49 = vpop.f32.mrb[4].mxu1 }
  0xee   :  { %v147_v50 = vadd.f32 %v483_v26, %v146_v48  ;;  %v344_v51 = vpop.f32.mrb[5].mxu0  ;;  %v253_v52 = vsel %vm225_vm2, %v221_v47, 0.0  ;;  %v179_v53 = vadd.f32 %v483_v26, %v178_v49  ;;  %v360_v55 = vpop.f32.mrb[5].mxu1  ;;  %v229_v3 = vsel %vm225_vm2, %v213_v62, 0.0 }
  0xef   :  { %v149_v56 = vpop.f32.mrb[6].mxu0  ;;  %254 = vadd.xlane.f32.xlu1 %v253_v52  ;;  %v181_v57 = vpop.f32.mrb[6].mxu1 }
  0xf0   :  { %v194_v58 = vmax.f32 %v147_v50, 0.0  ;;  %v150_v59 = vadd.f32 %v483_v26, %v149_v56  ;;  %v345_v60 = vpop.f32.mrb[7].mxu0  ;;  %v202_v61 = vmax.f32 %v179_v53, 0.0  ;;  %v361_v63 = vpop.f32.mrb[7].mxu1  ;;  %v182_v25 = vadd.f32 %v483_v26, %v181_v57 }
  0xf1   :  { %251 = vadd.xlane.f32.xlu0 %v250_v54 }
  0xf2   :  { %v195_v0 = vmax.f32 %v150_v59, 0.0  ;;  %v214_v1 = vmul.f32 %v490_v35, %v194_v58  ;;  %v222_v2 = vmul.f32 %v490_v35, %v202_v61  ;;  %v203_v36 = vmax.f32 %v182_v25, 0.0 }
  0xf4   :  { %v232_v4 = vsel %vm225_vm2, %v214_v1, 0.0  ;;  %v215_v5 = vmul.f32 %v490_v35, %v195_v0  ;;  %v256_v10 = vsel %vm225_vm2, %v222_v2, 0.0  ;;  %v223_v44 = vmul.f32 %v490_v35, %v203_v36 }
  0xf5   :  { %230 = vadd.xlane.f32.xlu0 %v229_v3  ;;  %233 = vadd.xlane.f32.xlu1 %v232_v4  ;;  %v154_v6 = vpop.f32.mrb[8].mxu0  ;;  %v186_v7 = vpop.f32.mrb[8].mxu1 }
  0xf6   :  { %v155_v8 = vadd.f32 %v483_v26, %v154_v6  ;;  %v348_v9 = vpop.f32.mrb[9].mxu0  ;;  %v364_v11 = vpop.f32.mrb[9].mxu1  ;;  %v235_v17 = vsel %vm225_vm2, %v215_v5, 0.0  ;;  %v187_v21 = vadd.f32 %v483_v26, %v186_v7 }
  0xf7   :  { %v157_v12 = vpop.f32.mrb[10].mxu0  ;;  %v189_v13 = vpop.f32.mrb[10].mxu1 }
  0xf8   :  { %v196_v14 = vmax.f32 %v155_v8, 0.0  ;;  %v158_v15 = vadd.f32 %v483_v26, %v157_v12  ;;  %v349_v16 = vpop.f32.mrb[11].mxu0  ;;  %v365_v18 = vpop.f32.mrb[11].mxu1  ;;  %v204_v30 = vmax.f32 %v187_v21, 0.0 }
  0xf9   :  { %257 = vadd.xlane.f32.xlu0 %v256_v10  ;;  %236 = vadd.xlane.f32.xlu1 %v235_v17 }
  0xfa   :  { %v197_v19 = vmax.f32 %v158_v15, 0.0  ;;  %v216_v20 = vmul.f32 %v490_v35, %v196_v14  ;;  %v224_v39 = vmul.f32 %v490_v35, %v204_v30 }
  0xfc   :  { %v238_v22 = vsel %vm225_vm2, %v216_v20, 0.0  ;;  %v217_v23 = vmul.f32 %v490_v35, %v197_v19  ;;  %v263_v43 = vsel %vm262_vm3, %v224_v39, 0.0 }
  0xfd   :  { %239 = vadd.xlane.f32.xlu0 %v238_v22  ;;  %v162_v24 = vpop.f32.mrb[12].mxu0 }
  0xfe   :  { %v163_v27 = vadd.f32 %v483_v26, %v162_v24  ;;  %v352_v28 = vpop.f32.mrb[13].mxu0  ;;  %v241_v29 = vsel %vm225_vm2, %v217_v23, 0.0 }
  0xff   :  { %242 = vadd.xlane.f32.xlu1 %v241_v29  ;;  %v165_v31 = vpop.f32.mrb[14].mxu0 }
 0x100   :  { %v198_v32 = vmax.f32 %v163_v27, 0.0  ;;  %v166_v33 = vadd.f32 %v483_v26, %v165_v31  ;;  %v353_v34 = vpop.f32.mrb[15].mxu0  ;;  %v259_v26 = vsel %vm225_vm2, %v223_v44, 0.0 }
 0x102   :  { %v199_v37 = vmax.f32 %v166_v33, 0.0  ;;  %v218_v38 = vmul.f32 %v490_v35, %v198_v32 }
 0x104   :  { %v244_v40 = vsel %vm225_vm2, %v218_v38, 0.0  ;;  %v219_v41 = vmul.f32 %v490_v35, %v199_v37 }
 0x105   :  { %245 = vadd.xlane.f32.xlu0 %v244_v40 }
 0x106   :  { %v247_v42 = vsel %vm225_vm2, %v219_v41, 0.0 }
 0x107   :  { %248 = vadd.xlane.f32.xlu1 %v247_v42 }
 0x109   :  { %264 = vadd.xlane.f32.xlu0 %v263_v43 }
 0x10b   :  { %260 = vadd.xlane.f32.xlu1 %v259_v26 }
 0x17a   :  { %v228_v46 = vpop.xlane.xlu0 %227 }
 0x17b   :  { %v273_v47 = vadd.f32 %v318_v45, %v228_v46 }
 0x17c   :  { %v255_v48 = vpop.xlane.xlu1 %254 }
 0x17d   :  { %287 = vst.msk [vmem:[%s584_s5] sm:$0xff] %vm286_vm4, %v273_v47  ;;  %v282_v49 = vadd.f32 %v318_v45, %v255_v48 }
 0x17e   :  { %v252_v50 = vpop.xlane.xlu0 %251 }
 0x17f   :  { %296 = vst.msk [vmem:[%s584_s5 + $0x48] sm:$0xff] %vm286_vm4, %v282_v49  ;;  %v281_v35 = vadd.f32 %v318_v45, %v252_v50 }
 0x181   :  { %295 = vst.msk [vmem:[%s584_s5 + $0x40] sm:$0xff] %vm286_vm4, %v281_v35 }
 0x182   :  { %v231_v51 = vpop.xlane.xlu0 %230  ;;  %v234_v52 = vpop.xlane.xlu1 %233 }
 0x183   :  { %v274_v53 = vadd.f32 %v318_v45, %v231_v51  ;;  %v275_v54 = vadd.f32 %v318_v45, %v234_v52 }
 0x185   :  { %288 = vst.msk [vmem:[%s584_s5 + $0x8] sm:$0xff] %vm286_vm4, %v274_v53  ;;  %289 = vst.msk [vmem:[%s584_s5 + $0x10] sm:$0xff] %vm286_vm4, %v275_v54 }
 0x186   :  { %v258_v55 = vpop.xlane.xlu0 %257  ;;  %v237_v56 = vpop.xlane.xlu1 %236 }
 0x187   :  { %v283_v57 = vadd.f32 %v318_v45, %v258_v55  ;;  %v276_v58 = vadd.f32 %v318_v45, %v237_v56 }
 0x189   :  { %297 = vst.msk [vmem:[%s584_s5 + $0x50] sm:$0xff] %vm286_vm4, %v283_v57  ;;  %290 = vst.msk [vmem:[%s584_s5 + $0x18] sm:$0xff] %vm286_vm4, %v276_v58 }
 0x18a   :  { %v240_v59 = vpop.xlane.xlu0 %239 }
 0x18b   :  { %v277_v60 = vadd.f32 %v318_v45, %v240_v59 }
 0x18c   :  { %v243_v61 = vpop.xlane.xlu1 %242 }
 0x18d   :  { %291 = vst.msk [vmem:[%s584_s5 + $0x20] sm:$0xff] %vm286_vm4, %v277_v60  ;;  %v278_v62 = vadd.f32 %v318_v45, %v243_v61 }
 0x18f   :  { %292 = vst.msk [vmem:[%s584_s5 + $0x28] sm:$0xff] %vm286_vm4, %v278_v62 }
 0x192   :  { %v246_v63 = vpop.xlane.xlu0 %245 }
 0x193   :  { %v279_v0 = vadd.f32 %v318_v45, %v246_v63 }
 0x194   :  { %v249_v1 = vpop.xlane.xlu1 %248 }
 0x195   :  { %293 = vst.msk [vmem:[%s584_s5 + $0x30] sm:$0xff] %vm286_vm4, %v279_v0  ;;  %v280_v2 = vadd.f32 %v318_v45, %v249_v1 }
 0x196   :  { %v265_v3 = vpop.xlane.xlu0 %264 }
 0x197   :  { %294 = vst.msk [vmem:[%s584_s5 + $0x38] sm:$0xff] %vm286_vm4, %v280_v2  ;;  %v285_v4 = vadd.f32 %v318_v45, %v265_v3 }
 0x198   :  { %v261_v5 = vpop.xlane.xlu1 %260 }
 0x199   :  { %300 = vst.msk [vmem:[%s584_s5 + $0x60] sm:$0xf] %vm299_vm5, %v285_v4  ;;  %v284_v6 = vadd.f32 %v318_v45, %v261_v5 }
 0x19b   :  { %298 = vst.msk [vmem:[%s584_s5 + $0x58] sm:$0xff] %vm286_vm4, %v284_v6 }

</bundles_post_ra>
